<compile_context>
chip_gen: v5e
topology: v5e:2x2
jax: 0.10.0
libtpu: 0.0.40
codegen_flags: <defaults>
</compile_context>

<pallas_src>
import functools

import jax
import jax.numpy as jnp
from jax.experimental import pallas as pl
from jax.experimental.pallas import tpu as pltpu


def _round_up(n, m):
    return (n + m - 1) // m * m


def _cdiv(a, b):
    return (a + b - 1) // b


def _gated_hidden(g, two_h):
    """LSTM cell output for zero initial (h, c).

    g: (B, 3*two_h) gate pre-activations, gate-major [i | g | o]; each gate
    slice holds the fused [forward | reverse] columns (width two_h = 2*hidden).
    The forget gate was dropped at pack time (it multiplies c_prev == 0).
    """
    i = jax.nn.sigmoid(g[:, 0 * two_h:1 * two_h])
    gg = jnp.tanh(g[:, 1 * two_h:2 * two_h])
    o = jax.nn.sigmoid(g[:, 2 * two_h:3 * two_h])
    return o * jnp.tanh(i * gg)


def bilstm_kernel(x_ref, w1_ref, b1_ref, w2_ref, b2_ref, wfc_ref, bfc_ref,
                  out_ref, *, hidden):
    two_h = 2 * hidden

    # Layer 1: fwd+rev fused into one (in, 6H) bf16 matmul, f32 accumulate.
    x = x_ref[...].astype(jnp.bfloat16)
    g1 = jnp.dot(x, w1_ref[...], preferred_element_type=jnp.float32) + b1_ref[...]
    h1 = _gated_hidden(g1, two_h)              # (TB, 2H) == concat(h1_fwd, h1_rev)

    # Layer 2: same fusion over the (2H,) concatenated layer-1 output.
    g2 = jnp.dot(h1.astype(jnp.bfloat16), w2_ref[...],
                 preferred_element_type=jnp.float32) + b2_ref[...]
    h2 = _gated_hidden(g2, two_h)              # (TB, 2H) == lstm_out[:, -1, :]

    # fc (output_size == 1) as a VPU multiply + lane reduce, then reshaped to a
    # lane-dense (1, TB) slab so the final store is a full-width vst rather
    # than a 1-lane masked store.
    logits = jnp.sum(h2 * wfc_ref[...], axis=-1).reshape(1, -1) + bfc_ref[...]
    out_ref[...] = jax.nn.sigmoid(logits)


def _choose_batch_tile(batch, block_batch):
    """Batch tile: lane-dense output blocks need tb % 128 == 0 when grid > 1."""
    tb_full = _round_up(batch, 8)
    if tb_full <= 256:
        # Single tile; the output block equals the full output dims, so the
        # 128-lane divisibility constraint does not apply.
        return tb_full
    # >= 2 grid steps so both v7x TensorCores get work; 128-aligned tiles keep
    # the (1, tb) output blocks legal (and stores unmasked) when grid > 1.
    return max(128, min(block_batch, _round_up(_cdiv(batch, 2), 128)))


def bilstm_forward(x, kparams, *, hidden, block_batch=512):
    batch, input_size = x.shape
    out_size = kparams["bfc"].shape[1]
    assert out_size == 1, "fc is fused as a VPU multiply-reduce (output_size == 1)"

    block_batch = max(128, _round_up(block_batch, 128))
    tb = _choose_batch_tile(batch, block_batch)
    grid = _cdiv(batch, tb)
    b_out = grid * tb                      # padded, lane-dense output; sliced below

    def resident(shape):
        # Same block every grid step -> stays VMEM-resident, no per-step re-DMA.
        return pl.BlockSpec(shape, lambda i: (0, 0))

    out = pl.pallas_call(
        functools.partial(bilstm_kernel, hidden=hidden),
        out_shape=jax.ShapeDtypeStruct((1, b_out), jnp.float32),
        grid=(grid,),
        in_specs=[
            pl.BlockSpec((tb, input_size), lambda i: (i, 0)),
            resident(kparams["w1"].shape),
            resident(kparams["b1"].shape),
            resident(kparams["w2"].shape),
            resident(kparams["b2"].shape),
            resident(kparams["wfc"].shape),
            resident(kparams["bfc"].shape),
        ],
        out_specs=pl.BlockSpec((1, tb), lambda i: (0, i)),
        compiler_params=pltpu.CompilerParams(
            dimension_semantics=("parallel",)),
    )(x, kparams["w1"], kparams["b1"], kparams["w2"], kparams["b2"],
      kparams["wfc"], kparams["bfc"])

    # (1, b_out) lane-dense slab -> (batch, 1) column, matching the fc output.
    return out[0, :batch].reshape(batch, out_size)


def init_torch_params(key, input_size, hidden, output_size):
    """PyTorch-layout params: uniform(-1/sqrt(H), 1/sqrt(H)) like nn.LSTM/Linear."""
    def u(k, shape, bound):
        return jax.random.uniform(k, shape, jnp.float32, -bound, bound)

    k_lstm = 1.0 / float(hidden) ** 0.5
    k_fc = 1.0 / float(2 * hidden) ** 0.5
    keys = iter(jax.random.split(key, 18))

    p = {}
    for layer, in_sz in ((1, input_size), (2, 2 * hidden)):
        for d in ("f", "r"):
            p[f"w_ih_l{layer}{d}"] = u(next(keys), (4 * hidden, in_sz), k_lstm)
            p[f"w_hh_l{layer}{d}"] = u(next(keys), (4 * hidden, hidden), k_lstm)
            p[f"b_ih_l{layer}{d}"] = u(next(keys), (4 * hidden,), k_lstm)
            p[f"b_hh_l{layer}{d}"] = u(next(keys), (4 * hidden,), k_lstm)
    p["w_fc"] = u(next(keys), (output_size, 2 * hidden), k_fc)
    p["b_fc"] = u(next(keys), (output_size,), k_fc)
    return p


def pack_kernel_params(p, hidden):
    """Repack PyTorch-layout weights into the fused, gate-interleaved layout.

    For each layer the fwd/rev input-to-hidden weights are transposed and fused
    column-wise into one (in, 6H) matrix, gate-major [i | g | o], each gate
    holding interleaved [fwd | rev] columns; the two LSTM biases (b_ih + b_hh)
    are pre-summed and fused identically.  The forget gate (multiplies
    c_prev == 0) and W_hh (multiplies the zero initial state) are dropped for
    seq_len == 1.  Matmul weights stored bf16; biases f32.
    """
    def fuse(wf, wr, bf, br):
        wf_t, wr_t = wf.T, wr.T                     # (in, 4H) each
        cols, bias = [], []
        for gate in (0, 2, 3):                       # i, g, o (forget dropped)
            sl = slice(gate * hidden, (gate + 1) * hidden)
            cols += [wf_t[:, sl], wr_t[:, sl]]
            bias += [bf[sl], br[sl]]
        w = jnp.concatenate(cols, axis=1).astype(jnp.bfloat16)   # (in, 6H)
        b = jnp.concatenate(bias, axis=0)[None, :]               # (1, 6H) f32
        return w, b

    kp = {}
    kp["w1"], kp["b1"] = fuse(p["w_ih_l1f"], p["w_ih_l1r"],
                              p["b_ih_l1f"] + p["b_hh_l1f"],
                              p["b_ih_l1r"] + p["b_hh_l1r"])
    kp["w2"], kp["b2"] = fuse(p["w_ih_l2f"], p["w_ih_l2r"],
                              p["b_ih_l2f"] + p["b_hh_l2f"],
                              p["b_ih_l2r"] + p["b_hh_l2r"])
    kp["wfc"] = p["w_fc"]            # (1, 2H) row, used as VPU multiply-reduce
    kp["bfc"] = p["b_fc"][None, :]   # (1, 1)
    return kp


def bilstm_reference(x, p, hidden):
    """Pure-JAX f32 reference mirroring the PyTorch forward (eval mode)."""
    def lstm_dir(v, w_ih, w_hh, b_ih, b_hh):
        h0 = jnp.zeros((v.shape[0], hidden), jnp.float32)
        c0 = jnp.zeros((v.shape[0], hidden), jnp.float32)
        g = v @ w_ih.T + h0 @ w_hh.T + b_ih + b_hh
        i = jax.nn.sigmoid(g[:, 0 * hidden:1 * hidden])
        f = jax.nn.sigmoid(g[:, 1 * hidden:2 * hidden])
        gg = jnp.tanh(g[:, 2 * hidden:3 * hidden])
        o = jax.nn.sigmoid(g[:, 3 * hidden:4 * hidden])
        c = f * c0 + i * gg
        return o * jnp.tanh(c)

    h1 = jnp.concatenate([
        lstm_dir(x, p["w_ih_l1f"], p["w_hh_l1f"], p["b_ih_l1f"], p["b_hh_l1f"]),
        lstm_dir(x, p["w_ih_l1r"], p["w_hh_l1r"], p["b_ih_l1r"], p["b_hh_l1r"]),
    ], axis=-1)
    # inter-layer dropout: identity in eval mode
    h2 = jnp.concatenate([
        lstm_dir(h1, p["w_ih_l2f"], p["w_hh_l2f"], p["b_ih_l2f"], p["b_hh_l2f"]),
        lstm_dir(h1, p["w_ih_l2r"], p["w_hh_l2r"], p["b_ih_l2r"], p["b_hh_l2r"]),
    ], axis=-1)
    return jax.nn.sigmoid(h2 @ p["w_fc"].T + p["b_fc"])


if __name__ == "__main__":
    input_size, hidden, output_size = 16, 32, 1

    key = jax.random.PRNGKey(0)
    kx, kx2, kp = jax.random.split(key, 3)

    torch_params = init_torch_params(kp, input_size, hidden, output_size)
    kparams = pack_kernel_params(torch_params, hidden)

    # Small-batch case (tiny example sizes): single ragged tile, no host pad.
    x = jax.random.normal(kx, (2, input_size), jnp.float32)
    out = jax.block_until_ready(bilstm_forward(x, kparams, hidden=hidden))
    ref = bilstm_reference(x, torch_params, hidden)
    assert out.shape == (2, output_size)
    # bf16 matmul inputs (f32 accumulation / gate math) -> loosened tolerance.
    assert jnp.allclose(out, ref, atol=2e-2, rtol=2e-2), float(jnp.max(jnp.abs(out - ref)))

    # Multi-tile case: exercises grid > 1 ("parallel" batch axis), the
    # lane-dense (1, tb) output blocks, and the ragged (unpadded) last x tile.
    x2 = jax.random.normal(kx2, (300, input_size), jnp.float32)
    out2 = jax.block_until_ready(bilstm_forward(x2, kparams, hidden=hidden))
    ref2 = bilstm_reference(x2, torch_params, hidden)
    assert out2.shape == (300, output_size)
    assert jnp.allclose(out2, ref2, atol=2e-2, rtol=2e-2), float(jnp.max(jnp.abs(out2 - ref2)))

    print("KERNEL_OK")
</pallas_src>

<mosaic_0001>
module attributes {stable_mosaic.version = 11 : i64} {
  func.func @bilstm_kernel(%arg0: i32, %arg1: memref<8x16xf32, #tpu.memory_space<vmem>>, %arg2: memref<16x192xbf16, #tpu.memory_space<vmem>>, %arg3: memref<1x192xf32, #tpu.memory_space<vmem>>, %arg4: memref<64x192xbf16, #tpu.memory_space<vmem>>, %arg5: memref<1x192xf32, #tpu.memory_space<vmem>>, %arg6: memref<1x64xf32, #tpu.memory_space<vmem>>, %arg7: memref<1x1xf32, #tpu.memory_space<vmem>>, %arg8: memref<1x8xf32, #tpu.memory_space<vmem>>) attributes {dimension_semantics = [#tpu.dimension_semantics<parallel>], iteration_bounds = array<i64: 1>, scalar_prefetch = 0 : i64, scratch_operands = 0 : i64, tpu.core_type = #tpu.core_type<tc>, window_params = [{transform_indices = @transform_0, window_bounds = array<i64: 8, 16>}, {pipeline_mode = #tpu.pipeline_mode<synchronous>, transform_indices = @transform_1, window_bounds = array<i64: 16, 192>}, {pipeline_mode = #tpu.pipeline_mode<synchronous>, transform_indices = @transform_2, window_bounds = array<i64: 1, 192>}, {pipeline_mode = #tpu.pipeline_mode<synchronous>, transform_indices = @transform_3, window_bounds = array<i64: 64, 192>}, {pipeline_mode = #tpu.pipeline_mode<synchronous>, transform_indices = @transform_4, window_bounds = array<i64: 1, 192>}, {pipeline_mode = #tpu.pipeline_mode<synchronous>, transform_indices = @transform_5, window_bounds = array<i64: 1, 64>}, {pipeline_mode = #tpu.pipeline_mode<synchronous>, transform_indices = @transform_6, window_bounds = array<i64: 1, 1>}, {transform_indices = @transform_7, window_bounds = array<i64: 1, 8>}]} {
    %c0 = arith.constant 0 : index
    %c0_0 = arith.constant 0 : index
    %0 = vector.load %arg1[%c0, %c0_0] : memref<8x16xf32, #tpu.memory_space<vmem>>, vector<8x16xf32>
    %1 = arith.truncf %0 : vector<8x16xf32> to vector<8x16xbf16>
    %c0_1 = arith.constant 0 : index
    %c0_2 = arith.constant 0 : index
    %2 = vector.load %arg2[%c0_1, %c0_2] : memref<16x192xbf16, #tpu.memory_space<vmem>>, vector<16x192xbf16>
    %cst = arith.constant dense<0.000000e+00> : vector<8x192xf32>
    %3 = tpu.matmul %1, %2, %cst {dimension_numbers = #tpu.dot_dimension_numbers<[1], [0], [0], [1], [0, 0, 1, 1], [], []>} : vector<8x16xbf16>, vector<16x192xbf16>, vector<8x192xf32> -> vector<8x192xf32>
    %c0_3 = arith.constant 0 : index
    %c0_4 = arith.constant 0 : index
    %4 = vector.load %arg3[%c0_3, %c0_4] : memref<1x192xf32, #tpu.memory_space<vmem>>, vector<1x192xf32>
    %5 = vector.broadcast %4 : vector<1x192xf32> to vector<8x192xf32>
    %6 = arith.addf %3, %5 : vector<8x192xf32>
    %7 = vector.extract_strided_slice %6 {offsets = [0, 0], sizes = [8, 64], strides = [1, 1]} : vector<8x192xf32> to vector<8x64xf32>
    %8 = arith.negf %7 : vector<8x64xf32>
    %9 = math.exp %8 : vector<8x64xf32>
    %cst_5 = arith.constant 1.000000e+00 : f32
    %10 = vector.broadcast %cst_5 : f32 to vector<8x64xf32>
    %11 = arith.addf %10, %9 : vector<8x64xf32>
    %12 = arith.divf %10, %11 : vector<8x64xf32>
    %13 = vector.extract_strided_slice %6 {offsets = [0, 64], sizes = [8, 64], strides = [1, 1]} : vector<8x192xf32> to vector<8x64xf32>
    %14 = math.tanh %13 : vector<8x64xf32>
    %15 = vector.extract_strided_slice %6 {offsets = [0, 128], sizes = [8, 64], strides = [1, 1]} : vector<8x192xf32> to vector<8x64xf32>
    %16 = arith.negf %15 : vector<8x64xf32>
    %17 = math.exp %16 : vector<8x64xf32>
    %cst_6 = arith.constant 1.000000e+00 : f32
    %18 = vector.broadcast %cst_6 : f32 to vector<8x64xf32>
    %19 = arith.addf %18, %17 : vector<8x64xf32>
    %20 = arith.divf %18, %19 : vector<8x64xf32>
    %21 = arith.mulf %12, %14 : vector<8x64xf32>
    %22 = math.tanh %21 : vector<8x64xf32>
    %23 = arith.mulf %20, %22 : vector<8x64xf32>
    %24 = arith.truncf %23 : vector<8x64xf32> to vector<8x64xbf16>
    %c0_7 = arith.constant 0 : index
    %c0_8 = arith.constant 0 : index
    %25 = vector.load %arg4[%c0_7, %c0_8] : memref<64x192xbf16, #tpu.memory_space<vmem>>, vector<64x192xbf16>
    %cst_9 = arith.constant dense<0.000000e+00> : vector<8x192xf32>
    %26 = tpu.matmul %24, %25, %cst_9 {dimension_numbers = #tpu.dot_dimension_numbers<[1], [0], [0], [1], [0, 0, 1, 1], [], []>} : vector<8x64xbf16>, vector<64x192xbf16>, vector<8x192xf32> -> vector<8x192xf32>
    %c0_10 = arith.constant 0 : index
    %c0_11 = arith.constant 0 : index
    %27 = vector.load %arg5[%c0_10, %c0_11] : memref<1x192xf32, #tpu.memory_space<vmem>>, vector<1x192xf32>
    %28 = vector.broadcast %27 : vector<1x192xf32> to vector<8x192xf32>
    %29 = arith.addf %26, %28 : vector<8x192xf32>
    %30 = vector.extract_strided_slice %29 {offsets = [0, 0], sizes = [8, 64], strides = [1, 1]} : vector<8x192xf32> to vector<8x64xf32>
    %31 = arith.negf %30 : vector<8x64xf32>
    %32 = math.exp %31 : vector<8x64xf32>
    %cst_12 = arith.constant 1.000000e+00 : f32
    %33 = vector.broadcast %cst_12 : f32 to vector<8x64xf32>
    %34 = arith.addf %33, %32 : vector<8x64xf32>
    %35 = arith.divf %33, %34 : vector<8x64xf32>
    %36 = vector.extract_strided_slice %29 {offsets = [0, 64], sizes = [8, 64], strides = [1, 1]} : vector<8x192xf32> to vector<8x64xf32>
    %37 = math.tanh %36 : vector<8x64xf32>
    %38 = vector.extract_strided_slice %29 {offsets = [0, 128], sizes = [8, 64], strides = [1, 1]} : vector<8x192xf32> to vector<8x64xf32>
    %39 = arith.negf %38 : vector<8x64xf32>
    %40 = math.exp %39 : vector<8x64xf32>
    %cst_13 = arith.constant 1.000000e+00 : f32
    %41 = vector.broadcast %cst_13 : f32 to vector<8x64xf32>
    %42 = arith.addf %41, %40 : vector<8x64xf32>
    %43 = arith.divf %41, %42 : vector<8x64xf32>
    %44 = arith.mulf %35, %37 : vector<8x64xf32>
    %45 = math.tanh %44 : vector<8x64xf32>
    %46 = arith.mulf %43, %45 : vector<8x64xf32>
    %c0_14 = arith.constant 0 : index
    %c0_15 = arith.constant 0 : index
    %47 = vector.load %arg6[%c0_14, %c0_15] : memref<1x64xf32, #tpu.memory_space<vmem>>, vector<1x64xf32>
    %48 = vector.broadcast %47 : vector<1x64xf32> to vector<8x64xf32>
    %49 = arith.mulf %46, %48 : vector<8x64xf32>
    %cst_16 = arith.constant dense<0.000000e+00> : vector<8xf32>
    %50 = vector.multi_reduction <add>, %49, %cst_16 [1] : vector<8x64xf32> to vector<8xf32>
    %51 = vector.shape_cast %50 : vector<8xf32> to vector<1x8xf32>
    %c0_17 = arith.constant 0 : index
    %c0_18 = arith.constant 0 : index
    %52 = vector.load %arg7[%c0_17, %c0_18] : memref<1x1xf32, #tpu.memory_space<vmem>>, vector<1x1xf32>
    %53 = vector.broadcast %52 : vector<1x1xf32> to vector<1x8xf32>
    %54 = arith.addf %51, %53 : vector<1x8xf32>
    %55 = arith.negf %54 : vector<1x8xf32>
    %56 = math.exp %55 : vector<1x8xf32>
    %cst_19 = arith.constant 1.000000e+00 : f32
    %57 = vector.broadcast %cst_19 : f32 to vector<1x8xf32>
    %58 = arith.addf %57, %56 : vector<1x8xf32>
    %59 = arith.divf %57, %58 : vector<1x8xf32>
    %c0_20 = arith.constant 0 : index
    %c0_21 = arith.constant 0 : index
    %60 = vector.load %arg8[%c0_20, %c0_21] : memref<1x8xf32, #tpu.memory_space<vmem>>, vector<1x8xf32>
    tpu.vector_store %arg8[%c0_20, %c0_21], %59 {strides = array<i32>} : memref<1x8xf32, #tpu.memory_space<vmem>>, vector<1x8xf32>,
    return
  }
  func.func @transform_0(%arg0: i32) -> (i32, i32) {
    %c0_i32 = arith.constant 0 : i32
    %c0_i32_0 = arith.constant 0 : i32
    return %arg0, %c0_i32 : i32, i32
  }
  func.func @transform_1(%arg0: i32) -> (i32, i32) {
    %c0_i32 = arith.constant 0 : i32
    %c0_i32_0 = arith.constant 0 : i32
    %c0_i32_1 = arith.constant 0 : i32
    return %c0_i32, %c0_i32_0 : i32, i32
  }
  func.func @transform_2(%arg0: i32) -> (i32, i32) {
    %c0_i32 = arith.constant 0 : i32
    %c0_i32_0 = arith.constant 0 : i32
    %c0_i32_1 = arith.constant 0 : i32
    return %c0_i32, %c0_i32_0 : i32, i32
  }
  func.func @transform_3(%arg0: i32) -> (i32, i32) {
    %c0_i32 = arith.constant 0 : i32
    %c0_i32_0 = arith.constant 0 : i32
    %c0_i32_1 = arith.constant 0 : i32
    return %c0_i32, %c0_i32_0 : i32, i32
  }
  func.func @transform_4(%arg0: i32) -> (i32, i32) {
    %c0_i32 = arith.constant 0 : i32
    %c0_i32_0 = arith.constant 0 : i32
    %c0_i32_1 = arith.constant 0 : i32
    return %c0_i32, %c0_i32_0 : i32, i32
  }
  func.func @transform_5(%arg0: i32) -> (i32, i32) {
    %c0_i32 = arith.constant 0 : i32
    %c0_i32_0 = arith.constant 0 : i32
    %c0_i32_1 = arith.constant 0 : i32
    return %c0_i32, %c0_i32_0 : i32, i32
  }
  func.func @transform_6(%arg0: i32) -> (i32, i32) {
    %c0_i32 = arith.constant 0 : i32
    %c0_i32_0 = arith.constant 0 : i32
    %c0_i32_1 = arith.constant 0 : i32
    return %c0_i32, %c0_i32_0 : i32, i32
  }
  func.func @transform_7(%arg0: i32) -> (i32, i32) {
    %c0_i32 = arith.constant 0 : i32
    %c0_i32_0 = arith.constant 0 : i32
    return %c0_i32, %arg0 : i32, i32
  }
}

</mosaic_0001>

<bundles_post_ra>
// kernel: tpu_custom_call.1
= control target key start
LH: loop header
LB: loop body
LE: loop exit
PB: predicated region body
PF: predicated region fallthrough
CT: control target
= control target key end

     0   :  { %s639_s0 = inlined_call_operand.vmem [shape: f32[2,16], index: 0, kind: input, shape index: {}]   ;;  %s640_s1 = inlined_call_operand.hbm [shape: bf16[16,192], index: 1, kind: input, shape index: {}]   ;;  %s641_s2 = inlined_call_operand.hbm [shape: f32[1,192], index: 2, kind: input, shape index: {}]   ;;  %s642_s3 = inlined_call_operand.hbm [shape: bf16[64,192], index: 3, kind: input, shape index: {}]   ;;  %s643_s4 = inlined_call_operand.vmem [shape: f32[1,192], index: 4, kind: input, shape index: {}]   ;;  %s644_s5 = inlined_call_operand.vmem [shape: f32[1,64], index: 5, kind: input, shape index: {}]   ;;  %s645_s6 = inlined_call_operand.<no memory space> [shape: f32[1,1], index: 6, kind: input, shape index: {}]   ;;  %s646_s7 = inlined_call_operand.hbm [shape: f32[1,8], index: 7, kind: output, shape index: {}]  }
   0x1   :  { %v12_v0 = vstv %s645_s6 }
   0x2   :  { %13 = vst [vmem:[#allocation2] sm:$0x1] %v12_v0 }
   0x3   :  { %14 = vsyncpa [#allocation4], 0 }
   0x4   :  { %15 = vsyncpa [#allocation7], 0  ;;  %s37_s28 = sshll.u32 %s641_s2, 4  ;;  %s38_s28 = int_to_ptr.hbm [resolvable:$true] %s37_s28 }
   0x5   :  { %16 = vsyncpa [#allocation5], 0  ;;  %s562_s29 = smov [#allocation6]   ;;  %s23_s10 = sshll.u32 %s640_s1, 4  ;;  %s24_s10 = int_to_ptr.hbm [resolvable:$true] %s23_s10 }
   0x6   :  { %s39_s30 = sshll.u32 %s562_s29, 4  ;;  %s563_s11 = smov [#allocation3]   ;;  %s40_s30 = int_to_ptr.vmem [resolvable:$true] %s39_s30 }
   0x7   :  { %42 = dma.hbm_to_vmem [thread:$0]  %s38_s28, 32, %s40_s30, [#allocation7]  }
   0x8   :  { %s25_s6 = sshll.u32 %s563_s11, 4  ;;  %s564_s12 = smov 128   ;;  %s26_s6 = int_to_ptr.vmem [resolvable:$true] %s25_s6 }
   0x9   :  { %s565_s13 = smov 8   ;;  %s47_s2 = sshll.u32 %s642_s3, 4  ;;  %s48_s2 = int_to_ptr.hbm [resolvable:$true] %s47_s2 }
   0xa   :  { %31 = dma.hbm_to_vmem [thread:$0]  %s24_s10, 256, %s26_s6, [#allocation4], %s564_s12, %s564_s12, %s565_s13  }
   0xb   :  { %s566_s16 = smov [#allocation8]  }
   0xc   :  { %s49_s17 = sshll.u32 %s566_s16, 4  ;;  %s50_s17 = int_to_ptr.vmem [resolvable:$true] %s49_s17 }
   0xd   :  { %55 = dma.hbm_to_vmem [thread:$0]  %s48_s2, 1024, %s50_s17, [#allocation7], %s564_s12, %s564_s12, %s565_s13  }
   0xe   :  { %556 = dma.done.wait [#allocation4], 256  }
   0xf   :  { %557 = vsyncadd [#allocation4], 4294967040 }
  0x10   :  { %558 = dma.done.wait [#allocation7], 1056  }
  0x11   :  { %559 = vsyncadd [#allocation7], 4294966240  ;;  %v364_v1 = vld [vmem:[#allocation3] sm:$0xf]  ;;  %v412_v2 = vld [vmem:[#allocation3 + $0x4] sm:$0xf0] }
  0x12   :  { %v75_v3 = vld [vmem:[%s639_s0] sm:$0xff]  ;;  %v365_v4 = vor.u32 %v412_v2, %v364_v1  ;;  %v366_v6 = vld [vmem:[#allocation3 + $0x8] sm:$0xf0]  ;;  %vm95_vm0 = vcmask 130048   ;;  %v79_v15 = vld [vmem:[#allocation6] sm:$0x3] }
  0x13   :  { %v411_v5 = vld [vmem:[#allocation3 + $0x4] sm:$0xf]  ;;  %v76_v7 = vpack.c.bf16 %v75_v3, %v75_v3  ;;  %v420_v10 = vld [vmem:[#allocation8 + $0x34] sm:$0xf0]  ;;  %v402_v13 = vld [vmem:[#allocation8 + $0x38] sm:$0xf0] }
  0x14   :  { %v369_v8 = vor.u32 %v411_v5, %v366_v6  ;;  %106 = vmatpush.bf16.msra.mxu0 %v365_v4  ;;  %v400_v9 = vld [vmem:[#allocation8 + $0x30] sm:$0xf]  ;;  %v419_v11 = vld [vmem:[#allocation8 + $0x34] sm:$0xf]  ;;  %v81_v16 = vperm.slane %v79_v15, 0  ;;  %s567_s0 = smov 64  }
  0x15   :  { %v401_v12 = vor.u32 %v420_v10, %v400_v9  ;;  %v405_v14 = vor.u32 %v419_v11, %v402_v13  ;;  %v82_v24 = vperm.slane %v79_v15, 1  ;;  %v392_v29 = vld [vmem:[#allocation8 + $0x20] sm:$0xf]  ;;  %v418_v30 = vld [vmem:[#allocation8 + $0x24] sm:$0xf0]  ;;  %vm226_vm9 = vcmask 523264  }
  0x16   :  { %119 = vmatpush.bf16.msra.mxu1 %v369_v8  ;;  %v417_v31 = vld [vmem:[#allocation8 + $0x24] sm:$0xf]  ;;  %v393_v32 = vor.u32 %v418_v30, %v392_v29  ;;  %v394_v33 = vld [vmem:[#allocation8 + $0x28] sm:$0xf0]  ;;  %v384_v35 = vld [vmem:[#allocation8 + $0x10] sm:$0xf] }
  0x17   :  { %370 = vmatmul.msk.bf16.vlgmr.msra.gmra.mxu0 %vm95_vm0, %v76_v7  ;;  %234 = vmatpush.bf16.msra.mxu2 %v401_v12  ;;  %v397_v34 = vor.u32 %v417_v31, %v394_v33  ;;  %v416_v36 = vld [vmem:[#allocation8 + $0x14] sm:$0xf0]  ;;  %v415_v37 = vld [vmem:[#allocation8 + $0x14] sm:$0xf]  ;;  %v386_v39 = vld [vmem:[#allocation8 + $0x18] sm:$0xf0] }
  0x18   :  { %247 = vmatpush.bf16.msra.mxu3 %v405_v14  ;;  %v385_v38 = vor.u32 %v416_v36, %v384_v35  ;;  %v376_v40 = vld [vmem:[#allocation8] sm:$0xf]  ;;  %v414_v41 = vld [vmem:[#allocation8 + $0x4] sm:$0xf0]  ;;  %v389_v42 = vor.u32 %v415_v37, %v386_v39  ;;  %v413_v43 = vld [vmem:[#allocation8 + $0x4] sm:$0xf] }
  0x19   :  { %371 = vmatmul.msk.bf16.vlgmr.msra.gmra.mxu1 %vm95_vm0, %v76_v7  ;;  %v378_v44 = vld [vmem:[#allocation8 + $0x8] sm:$0xf0]  ;;  %v377_v46 = vor.u32 %v414_v41, %v376_v40  ;;  %v568_v11 = vmov 0   ;;  %s351_s24 = sshll.u32 %s646_s7, 4  ;;  %s352_s24 = int_to_ptr.hbm [resolvable:$true] %s351_s24 }
  0x1a   :  { %v381_v47 = vor.u32 %v413_v43, %v378_v44  ;;  %v310_v10 = vld [vmem:[#allocation2] sm:$0x1]  ;;  %429 = vset.pattern.permute.xlu1 %v568_v11  ;;  %430 = vset.pattern.permute.xlu0 %v568_v11 }
  0x1b   :  { %235 = vmatpush.bf16.msra.mxu2 %v393_v32  ;;  %313 = vperm.xlu1 %429, %v310_v10   ;;  %v180_v12 = vld [vmem:[%s643_s4] sm:$0x3] }
  0x1c   :  { %248 = vmatpush.bf16.msra.mxu3 %v397_v34  ;;  %v182_v13 = vperm.slane %v180_v12, 0 }
  0x1f   :  { %236 = vmatpush.bf16.msra.mxu2 %v385_v38 }
  0x20   :  { %249 = vmatpush.bf16.msra.mxu3 %v389_v42 }
  0x23   :  { %237 = vmatpush.bf16.msra.mxu2 %v377_v46 }
  0x24   :  { %250 = vmatpush.bf16.msra.mxu3 %v381_v47 }
  0x94   :  { %v108_v17 = vpop.f32.mrf.mxu0 }
  0x95   :  { %v109_v18 = vadd.f32 %v108_v17, %v81_v16 }
  0x96   :  { %v121_v19 = vpop.f32.mrf.mxu1 }
  0x97   :  { %432 = vtanh.f32 %v109_v18  ;;  %v372_v23 = vmul.f32 -1.442695, %v109_v18  ;;  %v122_v25 = vadd.f32 %v121_v19, %v82_v24 }
  0x99   :  { %434 = vpow2.f32 %v372_v23  ;;  %v373_v27 = vmul.f32 -1.442695, %v122_v25 }
  0x9b   :  { %436 = vpow2.f32 %v373_v27 }
  0x9c   :  { %v110_v20 = vpop.f32.mrf.mxu0 }
  0x9d   :  { %v433_v21 = vpop.eup %432 }
  0x9e   :  { %v123_v22 = vpop.f32.mrf.mxu1  ;;  %165 = vrot.lane.b32.xlu0 %v433_v21, %s567_s0  ;;  %v183_v21 = vperm.slane %v180_v12, 1 }
  0x9f   :  { %v435_v26 = vpop.eup %434 }
  0xa0   :  { %v128_v28 = vadd.f32 1.0, %v435_v26 }
  0xa1   :  { %v437_v45 = vpop.eup %436 }
  0xa2   :  { %438 = vrcp.f32 %v128_v28  ;;  %v148_v48 = vadd.f32 1.0, %v437_v45  ;;  %v140_v56 = vand.u32 2147483648, %v128_v28  ;;  %vm134_vm2 = vweird.f32 %v128_v28 }
  0xa3   :  { %v138_v58 = vand.u32 2147483647, %v128_v28 }
  0xa4   :  { %440 = vrcp.f32 %v148_v48  ;;  %v141_v60 = vor.u32 1.1754944e-38, %v140_v56  ;;  %vm154_vm5 = vweird.f32 %v148_v48  ;;  %v160_v1 = vand.u32 2147483648, %v148_v48 }
  0xa5   :  { %vm139_vm4 = vcmp.eq.f32.partialorder %v138_v58, 8.507059e+37  ;;  %v158_v3 = vand.u32 2147483647, %v148_v48 }
  0xa6   :  { %v161_v4 = vor.u32 1.1754944e-38, %v160_v1  ;;  %v338_v1 = vlaneseq }
  0xa7   :  { %vm159_vm8 = vcmp.eq.f32.partialorder %v158_v3, 8.507059e+37 }
  0xa8   :  { %v439_v49 = vpop.eup %438 }
  0xa9   :  { %v130_v50 = vmul.f32 %v439_v49, %v128_v28  ;;  %vm135_vm1 = vweird.f32 %v439_v49 }
  0xaa   :  { %v441_v52 = vpop.eup %440  ;;  %vm136_vm3 = vmor %vm134_vm2, %vm135_vm1 }
  0xab   :  { %v131_v51 = vsub.f32 1.0, %v130_v50  ;;  %v150_v54 = vmul.f32 %v441_v52, %v148_v48  ;;  %vm155_vm6 = vweird.f32 %v441_v52 }
  0xac   :  { %vm156_vm7 = vmor %vm154_vm5, %vm155_vm6  ;;  %vm342_vm6 = vcmask 57344  }
  0xad   :  { %v132_v53 = vmul.f32 %v439_v49, %v131_v51  ;;  %v151_v57 = vsub.f32 1.0, %v150_v54 }
  0xaf   :  { %v133_v55 = vadd.f32 %v439_v49, %v132_v53  ;;  %v152_v61 = vmul.f32 %v441_v52, %v151_v57 }
  0xb1   :  { %v137_v59 = vsel %vm136_vm3, %v439_v49, %v133_v55  ;;  %v153_v2 = vadd.f32 %v441_v52, %v152_v61  ;;  %v431_v49 = vld [vmem:[%s644_s5] ss:$0 sm:$0xff]  ;;  %v314_v55 = vpop.permute.xlu1 %313  ;;  %s569_s5 = smov [#allocation9]  }
  0xb2   :  { %v142_v63 = vsel %vm139_vm4, %v141_v60, %v137_v59  ;;  %v316_v56 = vperm.slane %v314_v55, 0  ;;  %s349_s21 = sshll.u32 %s569_s5, 4  ;;  %s350_s21 = int_to_ptr.vmem [resolvable:$true] %s349_s21 }
  0xb3   :  { %v157_v5 = vsel %vm156_vm7, %v441_v52, %v153_v2 }
  0xb4   :  { %v162_v7 = vsel %vm159_vm8, %v161_v4, %v157_v5 }
 0x110   :  { %v166_v62 = vpop.permute.xlu0 %165 }
 0x111   :  { %v168_v0 = vmul.f32 %v166_v62, %v142_v63 }
 0x113   :  { %442 = vtanh.f32 %v168_v0 }
 0x119   :  { %v443_v6 = vpop.eup %442 }
 0x11a   :  { %v170_v8 = vmul.f32 %v443_v6, %v162_v7  ;;  %v339_v6 = vand.u32 127, %v338_v1 }
 0x11c   :  { %v171_v9 = vpack.c.bf16 %v170_v8, %v170_v8 }
 0x11e   :  { %406 = vmatmul.msk.bf16.vlgmr.msra.gmra.mxu2 %vm226_vm9, %v171_v9  ;;  %407 = vmatmul.msk.bf16.vlgmr.msra.gmra.mxu3 %vm226_vm9, %v171_v9 }
 0x1a1   :  { %v239_v14 = vpop.f32.mrf.mxu2  ;;  %v252_v15 = vpop.f32.mrf.mxu3 }
 0x1a2   :  { %v240_v16 = vadd.f32 %v239_v14, %v182_v13  ;;  %v253_v22 = vadd.f32 %v252_v15, %v183_v21 }
 0x1a4   :  { %444 = vtanh.f32 %v240_v16  ;;  %v408_v20 = vmul.f32 -1.442695, %v240_v16  ;;  %v409_v23 = vmul.f32 -1.442695, %v253_v22 }
 0x1a6   :  { %446 = vpow2.f32 %v408_v20 }
 0x1a7   :  { %448 = vpow2.f32 %v409_v23 }
 0x1a9   :  { %v241_v17 = vpop.f32.mrf.mxu2  ;;  %v254_v18 = vpop.f32.mrf.mxu3 }
 0x1aa   :  { %v445_v19 = vpop.eup %444 }
 0x1ab   :  { %296 = vrot.lane.b32.xlu0 %v445_v19, %s567_s0 }
 0x1ac   :  { %v447_v24 = vpop.eup %446 }
 0x1ad   :  { %v259_v25 = vadd.f32 1.0, %v447_v24  ;;  %v449_v26 = vpop.eup %448 }
 0x1ae   :  { %v279_v27 = vadd.f32 1.0, %v449_v26 }
 0x1af   :  { %450 = vrcp.f32 %v259_v25  ;;  %v271_v35 = vand.u32 2147483648, %v259_v25  ;;  %vm265_vm11 = vweird.f32 %v259_v25  ;;  %v269_v37 = vand.u32 2147483647, %v259_v25 }
 0x1b0   :  { %452 = vrcp.f32 %v279_v27  ;;  %v291_v45 = vand.u32 2147483648, %v279_v27  ;;  %vm285_vm15 = vweird.f32 %v279_v27  ;;  %v289_v46 = vand.u32 2147483647, %v279_v27 }
 0x1b1   :  { %v272_v39 = vor.u32 1.1754944e-38, %v271_v35  ;;  %vm270_vm13 = vcmp.eq.f32.partialorder %v269_v37, 8.507059e+37 }
 0x1b2   :  { %v292_v48 = vor.u32 1.1754944e-38, %v291_v45  ;;  %vm290_vm1 = vcmp.eq.f32.partialorder %v289_v46, 8.507059e+37 }
 0x1b5   :  { %v451_v28 = vpop.eup %450 }
 0x1b6   :  { %v261_v29 = vmul.f32 %v451_v28, %v259_v25  ;;  %v453_v31 = vpop.eup %452  ;;  %vm266_vm10 = vweird.f32 %v451_v28 }
 0x1b7   :  { %v281_v33 = vmul.f32 %v453_v31, %v279_v27  ;;  %vm267_vm12 = vmor %vm265_vm11, %vm266_vm10  ;;  %vm286_vm14 = vweird.f32 %v453_v31 }
 0x1b8   :  { %v262_v30 = vsub.f32 1.0, %v261_v29  ;;  %vm287_vm0 = vmor %vm285_vm15, %vm286_vm14 }
 0x1b9   :  { %v282_v36 = vsub.f32 1.0, %v281_v33 }
 0x1ba   :  { %v263_v32 = vmul.f32 %v451_v28, %v262_v30 }
 0x1bb   :  { %v283_v40 = vmul.f32 %v453_v31, %v282_v36 }
 0x1bc   :  { %v264_v34 = vadd.f32 %v451_v28, %v263_v32 }
 0x1bd   :  { %v284_v44 = vadd.f32 %v453_v31, %v283_v40 }
 0x1be   :  { %v268_v38 = vsel %vm267_vm12, %v451_v28, %v264_v34 }
 0x1bf   :  { %v273_v42 = vsel %vm270_vm13, %v272_v39, %v268_v38  ;;  %v288_v47 = vsel %vm287_vm0, %v453_v31, %v284_v44 }
 0x1c0   :  { %v293_v51 = vsel %vm290_vm1, %v292_v48, %v288_v47 }
 0x21d   :  { %v297_v41 = vpop.permute.xlu0 %296 }
 0x21e   :  { %v299_v43 = vmul.f32 %v297_v41, %v273_v42 }
 0x220   :  { %454 = vtanh.f32 %v299_v43 }
 0x226   :  { %v455_v50 = vpop.eup %454 }
 0x227   :  { %v301_v52 = vmul.f32 %v455_v50, %v293_v51 }
 0x229   :  { %v306_v53 = vmul.f32 %v431_v49, %v301_v52 }
 0x22b   :  { %v307_v54 = vsel %vm226_vm9, %v306_v53, 0.0 }
 0x22c   :  { %308 = vadd.xlane.f32.xlu1 %v307_v54 }
 0x29f   :  { %v309_v57 = vpop.xlane.xlu1 %308 }
 0x2a0   :  { %v317_v58 = vadd.f32 %v316_v56, %v309_v57 }
 0x2a2   :  { %v410_v59 = vmul.f32 -1.442695, %v317_v58 }
 0x2a4   :  { %456 = vpow2.f32 %v410_v59 }
 0x2aa   :  { %v457_v60 = vpop.eup %456 }
 0x2ab   :  { %v321_v61 = vadd.f32 1.0, %v457_v60 }
 0x2ad   :  { %458 = vrcp.f32 %v321_v61  ;;  %v333_v2 = vand.u32 2147483648, %v321_v61  ;;  %v331_v4 = vand.u32 2147483647, %v321_v61  ;;  %vm327_vm3 = vweird.f32 %v321_v61 }
 0x2af   :  { %v334_v7 = vor.u32 1.1754944e-38, %v333_v2  ;;  %vm332_vm5 = vcmp.eq.f32.partialorder %v331_v4, 8.507059e+37 }
 0x2b3   :  { %v459_v62 = vpop.eup %458 }
 0x2b4   :  { %v323_v63 = vmul.f32 %v459_v62, %v321_v61  ;;  %vm328_vm2 = vweird.f32 %v459_v62 }
 0x2b5   :  { %vm329_vm4 = vmor %vm327_vm3, %vm328_vm2 }
 0x2b6   :  { %v324_v0 = vsub.f32 1.0, %v323_v63 }
 0x2b8   :  { %v325_v3 = vmul.f32 %v459_v62, %v324_v0 }
 0x2ba   :  { %v326_v5 = vadd.f32 %v459_v62, %v325_v3 }
 0x2bc   :  { %v330_v8 = vsel %vm329_vm4, %v459_v62, %v326_v5 }
 0x2bd   :  { %v335_v9 = vsel %vm332_vm5, %v334_v7, %v330_v8 }
 0x2be   :  { %v340_v10 = vperm.slane %v335_v9, %v339_v6 }
 0x2c0   :  { %343 = vst.msk [vmem:[#allocation9] sm:$0x1] %vm342_vm6, %v340_v10 }
 0x2c1   :  { %354 = dma.vmem_to_hbm [thread:$0]  %s350_s21, 16, %s352_s24, [#allocation5]  }
 0x2c2   :  { %560 = dma.done.wait [#allocation5], 16  }
 0x2c3   :  { %561 = vsyncadd [#allocation5], 4294967280 }
 0x2c4   :  { %359 = vsyncpa [#allocation4], 1 }
 0x2c5   :  { %360 = vsyncpa [#allocation7], 1 }
 0x2c6   :  { %361 = vsyncpa [#allocation5], 1 }

</bundles_post_ra>
